<compile_context>
chip_gen: v6e
topology: v6e:2x2x1
jax: 0.10.0
libtpu: 0.0.40
codegen_flags: <defaults>
</compile_context>

<pallas_src>
import functools

import jax
import jax.numpy as jnp
from jax.experimental import pallas as pl
from jax.experimental.pallas import tpu as pltpu

_LANE = 128        # lane width (last-dim alignment)
_SUBLANE = 8       # sublane count (second-to-last dim alignment, f32)
_BATCH_TILE = 256  # rows per grid step on the batched (replay-buffer) path
_SMALL_BATCH = 256 # <= this: single-block fast path (no grid)


def _round_up(n, m):
    return ((n + m - 1) // m) * m


def _qnet_kernel(x_ref, w_ref, o_ref, *, in_aug, hid_aug, out_pad):
    # Fully fused MLP on one VMEM-resident tile:
    #   h = ReLU(x_aug @ W1_aug);  y = h @ W2_aug
    # Biases live inside the augmented weights (ones column on x propagates
    # through W1_aug and survives the ReLU), so no bias add is needed.
    # w_ref is the stacked (2, R, C) weight operand; slices are static and
    # 128-aligned, so they are free ref views (no relayout).
    w1 = w_ref[0, :in_aug, :hid_aug]
    w2 = w_ref[1, :hid_aug, :out_pad]
    h = jnp.maximum(
        jnp.dot(x_ref[...], w1, preferred_element_type=jnp.float32), 0.0)
    o_ref[...] = jnp.dot(h, w2, preferred_element_type=jnp.float32)


def prepare_qnet_params(w1, b1, w2, b2):
    """Fold biases into augmented, lane-aligned weights and stack them into a
    single VMEM operand. Call once, reuse across all forward calls.

    w1: [In, H], b1: [H], w2: [H, Out], b2: [Out] -> (w_stack, dims)
    """
    in_size, hid = w1.shape
    _, out = w2.shape
    in_aug = _round_up(in_size + 1, _LANE)    # +1 ones column on x
    hid_aug = _round_up(hid + 1, _LANE)       # +1 propagated ones column
    out_pad = _round_up(out, _LANE)           # lane-dense output stores
    rows = max(in_aug, hid_aug)
    cols = max(hid_aug, out_pad)

    w1a = jnp.zeros((rows, cols), jnp.float32)
    w1a = w1a.at[:in_size, :hid].set(w1.astype(jnp.float32))
    w1a = w1a.at[in_aug - 1, :hid].set(jnp.asarray(b1, jnp.float32).reshape(-1))
    w1a = w1a.at[in_aug - 1, hid_aug - 1].set(1.0)   # keep ones column alive

    w2a = jnp.zeros((rows, cols), jnp.float32)
    w2a = w2a.at[:hid, :out].set(w2.astype(jnp.float32))
    w2a = w2a.at[hid_aug - 1, :out].set(jnp.asarray(b2, jnp.float32).reshape(-1))

    w_stack = jnp.stack([w1a, w2a], axis=0)          # single (2, R, C) operand
    dims = (in_size, in_aug, hid_aug, out, out_pad)
    return w_stack, dims


@functools.partial(jax.jit, static_argnums=(2,))
def linear_qnet_forward(x, w_stack, dims):
    """x: [B, In]; returns [B, Out] float32 (same math as the nn.Module)."""
    in_size, in_aug, hid_aug, out, out_pad = dims
    b = x.shape[0]
    rows, cols = w_stack.shape[1], w_stack.shape[2]

    kernel = functools.partial(
        _qnet_kernel, in_aug=in_aug, hid_aug=hid_aug, out_pad=out_pad)

    if b <= _SMALL_BATCH:
        # Tiny-batch fast path: one whole-array VMEM block, no grid, no
        # pipeline setup. Everything below fuses into a single XLA dispatch.
        b_pad = _round_up(max(b, 1), _SUBLANE)
        x_aug = jnp.zeros((b_pad, in_aug), jnp.float32)
        x_aug = x_aug.at[:b, :in_size].set(x.astype(jnp.float32))
        x_aug = x_aug.at[:b, in_aug - 1].set(1.0)   # ones only on real rows

        y_pad = pl.pallas_call(
            kernel,
            out_shape=jax.ShapeDtypeStruct((b_pad, out_pad), jnp.float32),
            in_specs=[
                pl.BlockSpec(memory_space=pltpu.MemorySpace.VMEM),
                pl.BlockSpec(memory_space=pltpu.MemorySpace.VMEM),
            ],
            out_specs=pl.BlockSpec(memory_space=pltpu.MemorySpace.VMEM),
        )(x_aug, w_stack)
    else:
        # Replay-buffer / training path: grid over batch tiles; weights are
        # DMA'd once (constant index_map) and stay VMEM-resident; batch tiles
        # shard across v7x's two TensorCores via "parallel".
        b_pad = _round_up(b, _BATCH_TILE)
        x_aug = jnp.zeros((b_pad, in_aug), jnp.float32)
        x_aug = x_aug.at[:b, :in_size].set(x.astype(jnp.float32))
        x_aug = x_aug.at[:b, in_aug - 1].set(1.0)

        y_pad = pl.pallas_call(
            kernel,
            out_shape=jax.ShapeDtypeStruct((b_pad, out_pad), jnp.float32),
            grid_spec=pltpu.PrefetchScalarGridSpec(
                num_scalar_prefetch=0,
                grid=(b_pad // _BATCH_TILE,),
                in_specs=[
                    pl.BlockSpec((_BATCH_TILE, in_aug), lambda i: (i, 0)),
                    pl.BlockSpec((2, rows, cols), lambda i: (0, 0, 0)),
                ],
                out_specs=pl.BlockSpec((_BATCH_TILE, out_pad),
                                       lambda i: (i, 0)),
            ),
            compiler_params=pltpu.CompilerParams(
                dimension_semantics=("parallel",)),
        )(x_aug, w_stack)

    return y_pad[:b, :out]


def init_qnet_params(key, input_size, hidden_size, output_size=3):
    """Deterministic init matching PyTorch nn.Linear default:
       U(-1/sqrt(fan_in), 1/sqrt(fan_in)) for weights and biases."""
    k1, k2, k3, k4 = jax.random.split(key, 4)
    bound1 = 1.0 / jnp.sqrt(jnp.float32(input_size))
    bound2 = 1.0 / jnp.sqrt(jnp.float32(hidden_size))
    w1 = jax.random.uniform(k1, (input_size, hidden_size), jnp.float32,
                            -bound1, bound1)
    b1 = jax.random.uniform(k2, (hidden_size,), jnp.float32, -bound1, bound1)
    w2 = jax.random.uniform(k3, (hidden_size, output_size), jnp.float32,
                            -bound2, bound2)
    b2 = jax.random.uniform(k4, (output_size,), jnp.float32, -bound2, bound2)
    return w1, b1, w2, b2


if __name__ == "__main__":
    # Snake-game style shapes: batch=2, input=11, hidden=32, output=3.
    B, IN, HID, OUT = 2, 11, 32, 3
    key = jax.random.PRNGKey(0)
    kx, kp, kb = jax.random.split(key, 3)
    x = jax.random.normal(kx, (B, IN), jnp.float32)
    w1, b1, w2, b2 = init_qnet_params(kp, IN, HID, OUT)

    # One-time weight prep (folds biases, pads, stacks into one VMEM operand).
    w_stack, dims = prepare_qnet_params(w1, b1, w2, b2)

    # Action-selection path (tiny batch, single-block kernel).
    y = jax.block_until_ready(linear_qnet_forward(x, w_stack, dims))
    ref = jnp.maximum(x @ w1 + b1, 0.0) @ w2 + b2
    assert y.shape == (B, OUT)
    assert jnp.allclose(y, ref, atol=1e-5, rtol=1e-5)

    # Replay-buffer path (batch grid, VMEM-resident weights, parallel axis).
    BB = 512
    xb = jax.random.normal(kb, (BB, IN), jnp.float32)
    yb = jax.block_until_ready(linear_qnet_forward(xb, w_stack, dims))
    refb = jnp.maximum(xb @ w1 + b1, 0.0) @ w2 + b2
    assert yb.shape == (BB, OUT)
    assert jnp.allclose(yb, refb, atol=1e-4, rtol=1e-4)

    print("KERNEL_OK")
</pallas_src>

<mosaic_0001>
module attributes {stable_mosaic.version = 11 : i64} {
  func.func @_qnet_kernel(%arg0: memref<8x128xf32, #tpu.memory_space<vmem>>, %arg1: memref<2x128x128xf32, #tpu.memory_space<vmem>>, %arg2: memref<8x128xf32, #tpu.memory_space<vmem>>) attributes {dimension_semantics = [], scalar_prefetch = 0 : i64, scratch_operands = 0 : i64, tpu.core_type = #tpu.core_type<tc>} {
    %c0 = arith.constant 0 : index
    %c0_0 = arith.constant 0 : index
    %c0_1 = arith.constant 0 : index
    %0 = vector.load %arg1[%c0, %c0_0, %c0_1] : memref<2x128x128xf32, #tpu.memory_space<vmem>>, vector<1x128x128xf32>
    %1 = vector.shape_cast %0 : vector<1x128x128xf32> to vector<128x128xf32>
    %c1 = arith.constant 1 : index
    %c0_2 = arith.constant 0 : index
    %c0_3 = arith.constant 0 : index
    %2 = vector.load %arg1[%c1, %c0_2, %c0_3] : memref<2x128x128xf32, #tpu.memory_space<vmem>>, vector<1x128x128xf32>
    %3 = vector.shape_cast %2 : vector<1x128x128xf32> to vector<128x128xf32>
    %c0_4 = arith.constant 0 : index
    %c0_5 = arith.constant 0 : index
    %4 = vector.load %arg0[%c0_4, %c0_5] : memref<8x128xf32, #tpu.memory_space<vmem>>, vector<8x128xf32>
    %cst = arith.constant dense<0.000000e+00> : vector<8x128xf32>
    %5 = tpu.matmul %4, %1, %cst {dimension_numbers = #tpu.dot_dimension_numbers<[1], [0], [0], [1], [0, 0, 1, 1], [], []>} : vector<8x128xf32>, vector<128x128xf32>, vector<8x128xf32> -> vector<8x128xf32>
    %cst_6 = arith.constant 0.000000e+00 : f32
    %6 = vector.broadcast %cst_6 : f32 to vector<8x128xf32>
    %7 = arith.maximumf %5, %6 : vector<8x128xf32>
    %cst_7 = arith.constant dense<0.000000e+00> : vector<8x128xf32>
    %8 = tpu.matmul %7, %3, %cst_7 {dimension_numbers = #tpu.dot_dimension_numbers<[1], [0], [0], [1], [0, 0, 1, 1], [], []>} : vector<8x128xf32>, vector<128x128xf32>, vector<8x128xf32> -> vector<8x128xf32>
    %c0_8 = arith.constant 0 : index
    %c0_9 = arith.constant 0 : index
    %9 = vector.load %arg2[%c0_8, %c0_9] : memref<8x128xf32, #tpu.memory_space<vmem>>, vector<8x128xf32>
    tpu.vector_store %arg2[%c0_8, %c0_9], %8 {strides = array<i32>} : memref<8x128xf32, #tpu.memory_space<vmem>>, vector<8x128xf32>,
    return
  }
}

</mosaic_0001>

<bundles_post_ra>
// kernel: linear_qnet_forward.1
= control target key start
LH: loop header
LB: loop body
LE: loop exit
PB: predicated region body
PF: predicated region fallthrough
CT: control target
= control target key end

     0   :  { %7 = vsyncpa [#allocation3], 0  ;;  %s337_s9 = smov [#allocation2]   ;;  %s400_s0 = inlined_call_operand.vmem [shape: f32[8,128], index: 0, kind: input, shape index: {}]   ;;  %s401_s1 = inlined_call_operand.hbm [shape: f32[2,128,128], index: 1, kind: input, shape index: {}]   ;;  %s402_s2 = inlined_call_operand.vmem [shape: f32[8,128], index: 2, kind: output, shape index: {}]  }
   0x1   :  { %s15_s10 = sshll.u32 %s337_s9, 4  ;;  %s16_s10 = int_to_ptr.vmem [resolvable:$true] %s15_s10 }
   0x2   :  { %s323_s11 = scalar_lea.vmem %s16_s10, 4096  ;;  %p328_p1 = scmp.lt.s32.totalorder %s16_s10, %s16_s10 }
   0x3   :  { %p324_p0 = scmp.ne.s32.totalorder %s16_s10, %s323_s11  ;;  %p329_p2 = scmp.lt.s32.totalorder %s323_s11, %s323_s11 }
   0x5   :  { %p330_p3 = por %p329_p2, %p328_p1 }
   0x7   :  { %p331_p4 = pnand %p330_p3, %p324_p0 }
   0x9   :  { %334 = shalt.err (!%p331_p4)
}
   0xa   :  { %s338_s12 = smov 128   ;;  %s339_s13 = smov 8  }
   0xb   :  { %21 = dma.hbm_to_vmem [thread:$0]  %s401_s1, 4096, %s16_s10, [#allocation3], %s338_s12, %s338_s12, %s339_s13  }
   0xc   :  { %335 = dma.done.wait [#allocation3], 4096  }
   0xd   :  { %336 = vsyncadd [#allocation3], 4294963200  ;;  %v340_v0 = vmov 0.0   ;;  %vm341_vm0 = vmmov 0   ;;  %v40_v1 = vld [vmem:[#allocation2 + $0x78] sm:$0xff]  ;;  %v39_v2 = vld [vmem:[#allocation2 + $0x70] sm:$0xff] }
   0xe   :  { %240 = vmatprep.subr.mxu0 %v340_v0  ;;  %272 = vmatprep.mubr.msk.f32.mxu0 %vm341_vm0, %v340_v0  ;;  %v38_v3 = vld [vmem:[#allocation2 + $0x68] sm:$0xff]  ;;  %v37_v4 = vld [vmem:[#allocation2 + $0x60] sm:$0xff]  ;;  %v57_v5 = vld [vmem:[#allocation2 + $0xf8] sm:$0xff] }
   0xf   :  { %275 = vmatprep.subr.mxu1 %v340_v0  ;;  %307 = vmatprep.mubr.msk.f32.mxu1 %vm341_vm0, %v340_v0  ;;  %v36_v6 = vld [vmem:[#allocation2 + $0x58] sm:$0xff]  ;;  %v56_v7 = vld [vmem:[#allocation2 + $0xf0] sm:$0xff]  ;;  %v55_v8 = vld [vmem:[#allocation2 + $0xe8] sm:$0xff] }
  0x10   :  { %241 = vmatpush3.msra.mxu0 %v40_v1  ;;  %276 = vmatpush3.msra.mxu1 %v57_v5  ;;  %v35_v9 = vld [vmem:[#allocation2 + $0x50] sm:$0xff]  ;;  %v54_v10 = vld [vmem:[#allocation2 + $0xe0] sm:$0xff]  ;;  %v34_v11 = vld [vmem:[#allocation2 + $0x48] sm:$0xff] }
  0x11   :  { %242 = vmatprep.subr.mxu0 %v340_v0  ;;  %277 = vmatprep.subr.mxu1 %v340_v0  ;;  %v53_v12 = vld [vmem:[#allocation2 + $0xd8] sm:$0xff]  ;;  %v33_v13 = vld [vmem:[#allocation2 + $0x40] sm:$0xff]  ;;  %v52_v14 = vld [vmem:[#allocation2 + $0xd0] sm:$0xff] }
  0x12   :  { %243 = vmatpush3.msra.mxu0 %v39_v2  ;;  %278 = vmatpush3.msra.mxu1 %v56_v7  ;;  %v32_v15 = vld [vmem:[#allocation2 + $0x38] sm:$0xff]  ;;  %v51_v16 = vld [vmem:[#allocation2 + $0xc8] sm:$0xff]  ;;  %v31_v17 = vld [vmem:[#allocation2 + $0x30] sm:$0xff] }
  0x13   :  { %244 = vmatprep.subr.mxu0 %v340_v0  ;;  %279 = vmatprep.subr.mxu1 %v340_v0  ;;  %v50_v18 = vld [vmem:[#allocation2 + $0xc0] sm:$0xff]  ;;  %v30_v19 = vld [vmem:[#allocation2 + $0x28] sm:$0xff]  ;;  %v49_v20 = vld [vmem:[#allocation2 + $0xb8] sm:$0xff] }
  0x14   :  { %245 = vmatpush3.msra.mxu0 %v38_v3  ;;  %280 = vmatpush3.msra.mxu1 %v55_v8  ;;  %v29_v21 = vld [vmem:[#allocation2 + $0x20] sm:$0xff]  ;;  %v48_v22 = vld [vmem:[#allocation2 + $0xb0] sm:$0xff]  ;;  %v28_v23 = vld [vmem:[#allocation2 + $0x18] sm:$0xff] }
  0x15   :  { %246 = vmatprep.subr.mxu0 %v340_v0  ;;  %281 = vmatprep.subr.mxu1 %v340_v0  ;;  %v47_v24 = vld [vmem:[#allocation2 + $0xa8] sm:$0xff]  ;;  %v27_v25 = vld [vmem:[#allocation2 + $0x10] sm:$0xff]  ;;  %v46_v26 = vld [vmem:[#allocation2 + $0xa0] sm:$0xff] }
  0x16   :  { %247 = vmatpush3.msra.mxu0 %v37_v4  ;;  %282 = vmatpush3.msra.mxu1 %v54_v10  ;;  %v26_v27 = vld [vmem:[#allocation2 + $0x8] sm:$0xff]  ;;  %v45_v28 = vld [vmem:[#allocation2 + $0x98] sm:$0xff]  ;;  %v25_v29 = vld [vmem:[#allocation2] sm:$0xff] }
  0x17   :  { %248 = vmatprep.subr.mxu0 %v340_v0  ;;  %283 = vmatprep.subr.mxu1 %v340_v0  ;;  %v58_v30 = vld [vmem:[%s400_s0] sm:$0xff]  ;;  %v44_v31 = vld [vmem:[#allocation2 + $0x90] sm:$0xff]  ;;  %v43_v32 = vld [vmem:[#allocation2 + $0x88] sm:$0xff] }
  0x18   :  { %249 = vmatpush3.msra.mxu0 %v36_v6  ;;  %284 = vmatpush3.msra.mxu1 %v53_v12  ;;  %v42_v33 = vld [vmem:[#allocation2 + $0x80] sm:$0xff] }
  0x19   :  { %250 = vmatprep.subr.mxu0 %v340_v0  ;;  %285 = vmatprep.subr.mxu1 %v340_v0 }
  0x1a   :  { %251 = vmatpush3.msra.mxu0 %v35_v9  ;;  %286 = vmatpush3.msra.mxu1 %v52_v14 }
  0x1b   :  { %252 = vmatprep.subr.mxu0 %v340_v0  ;;  %287 = vmatprep.subr.mxu1 %v340_v0 }
  0x1c   :  { %253 = vmatpush3.msra.mxu0 %v34_v11  ;;  %288 = vmatpush3.msra.mxu1 %v51_v16 }
  0x1d   :  { %254 = vmatprep.subr.mxu0 %v340_v0  ;;  %289 = vmatprep.subr.mxu1 %v340_v0 }
  0x1e   :  { %255 = vmatpush3.msra.mxu0 %v33_v13  ;;  %290 = vmatpush3.msra.mxu1 %v50_v18 }
  0x1f   :  { %256 = vmatprep.subr.mxu0 %v340_v0  ;;  %291 = vmatprep.subr.mxu1 %v340_v0 }
  0x20   :  { %257 = vmatpush3.msra.mxu0 %v32_v15  ;;  %292 = vmatpush3.msra.mxu1 %v49_v20 }
  0x21   :  { %258 = vmatprep.subr.mxu0 %v340_v0  ;;  %293 = vmatprep.subr.mxu1 %v340_v0 }
  0x22   :  { %259 = vmatpush3.msra.mxu0 %v31_v17  ;;  %294 = vmatpush3.msra.mxu1 %v48_v22 }
  0x23   :  { %260 = vmatprep.subr.mxu0 %v340_v0  ;;  %295 = vmatprep.subr.mxu1 %v340_v0 }
  0x24   :  { %261 = vmatpush3.msra.mxu0 %v30_v19  ;;  %296 = vmatpush3.msra.mxu1 %v47_v24 }
  0x25   :  { %262 = vmatprep.subr.mxu0 %v340_v0  ;;  %297 = vmatprep.subr.mxu1 %v340_v0 }
  0x26   :  { %263 = vmatpush3.msra.mxu0 %v29_v21  ;;  %298 = vmatpush3.msra.mxu1 %v46_v26 }
  0x27   :  { %264 = vmatprep.subr.mxu0 %v340_v0  ;;  %299 = vmatprep.subr.mxu1 %v340_v0 }
  0x28   :  { %265 = vmatpush3.msra.mxu0 %v28_v23  ;;  %300 = vmatpush3.msra.mxu1 %v45_v28 }
  0x29   :  { %266 = vmatprep.subr.mxu0 %v340_v0  ;;  %301 = vmatprep.subr.mxu1 %v340_v0 }
  0x2a   :  { %267 = vmatpush3.msra.mxu0 %v27_v25  ;;  %302 = vmatpush3.msra.mxu1 %v44_v31 }
  0x2b   :  { %268 = vmatprep.subr.mxu0 %v340_v0  ;;  %303 = vmatprep.subr.mxu1 %v340_v0 }
  0x2c   :  { %269 = vmatpush3.msra.mxu0 %v26_v27  ;;  %304 = vmatpush3.msra.mxu1 %v43_v32 }
  0x2d   :  { %270 = vmatprep.subr.mxu0 %v340_v0  ;;  %305 = vmatprep.subr.mxu1 %v340_v0 }
  0x2e   :  { %271 = vmatpush3.msra.mxu0 %v25_v29  ;;  %306 = vmatpush3.msra.mxu1 %v42_v33 }
  0x2f   :  { %273 = vmatmul.mubr.f32.vlgmr.msra.gmra.mxu0 %v58_v30 }
  0xef   :  { %v125_v34 = vpop.f32.mrf.mxu0 }
  0xf0   :  { %v129_v35 = vmax.f32 %v125_v34, 0.0 }
  0xf1   :  { %v274_v36 = vpop.f32.mrf.mxu0 }
  0xf2   :  { %308 = vmatmul.mubr.f32.vlgmr.msra.gmra.mxu1 %v129_v35 }
 0x1b2   :  { %v196_v37 = vpop.f32.mrf.mxu1 }
 0x1b3   :  { %200 = vst [vmem:[%s402_s2] sm:$0xff] %v196_v37 }
 0x1b4   :  { %v309_v38 = vpop.f32.mrf.mxu1 }
 0x1b5   :  { %205 = vsyncpa [#allocation3], 1 }

</bundles_post_ra>
